<compile_context>
chip_gen: v7x
topology: tpu7x:2x2x1
jax: 0.10.0
libtpu: 0.0.40
codegen_flags: <defaults>
</compile_context>

<pallas_src>
import jax
import jax.numpy as jnp
from jax.experimental import pallas as pl
from jax.experimental.pallas import tpu as pltpu

_LANE = 128


def meta_learning_kernel(x_ref, orig_ref, w1x_ref, w1o_ref, b1_ref,
                         w2_ref, b2_ref, o_ref):
    """One batch tile of: out = x + 0.1 * L2(relu(L1([x; orig])))."""
    cdt = w1x_ref.dtype                       # MXU compute dtype (f32 or bf16)
    x = x_ref[...]                            # [TB, Hp] input dtype (residual)
    orig = orig_ref[...]                      # [TB, Hp] (may already be cdt)

    # Weights are (K_in, N_out): native MXU RHS layout, no transposes anywhere.
    h = (jnp.dot(x.astype(cdt), w1x_ref[...], preferred_element_type=jnp.float32)
         + jnp.dot(orig.astype(cdt), w1o_ref[...], preferred_element_type=jnp.float32)
         + b1_ref[...])                       # bias add in f32
    h = jnp.maximum(h, 0.0)                   # ReLU in f32

    adaptation = (jnp.dot(h.astype(cdt), w2_ref[...],
                          preferred_element_type=jnp.float32)
                  + b2_ref[...])

    # Residual in f32, single cast on the way out.
    o_ref[...] = (x.astype(jnp.float32) + 0.1 * adaptation).astype(o_ref.dtype)


def _round_up(n, m):
    return ((n + m - 1) // m) * m


def _round8_down(n):
    return max(8, (n // 8) * 8)


def _prep_params(w1, b1, w2, b2, H, Hp, cdt):
    # NOTE: in production do this ONCE at module init.
    # PyTorch Linear stores (out_features, in_features); transpose once to
    # (in, out) so the MXU consumes a native (K, N) RHS, and split the concat:
    #   [x; orig] @ W1.T == x @ W1[:, :H].T + orig @ W1[:, H:].T
    w1x = w1[:, :H].T.astype(cdt)
    w1o = w1[:, H:].T.astype(cdt)
    w2t = w2.T.astype(cdt)
    b1f = b1.astype(jnp.float32)
    b2f = b2.astype(jnp.float32)
    if Hp != H:
        p = Hp - H
        w1x = jnp.pad(w1x, ((0, p), (0, p)))
        w1o = jnp.pad(w1o, ((0, p), (0, p)))
        w2t = jnp.pad(w2t, ((0, p), (0, p)))
        b1f = jnp.pad(b1f, (0, p))
        b2f = jnp.pad(b2f, (0, p))
    return w1x, w1o, b1f.reshape(1, Hp), w2t, b2f.reshape(1, Hp)


def meta_learning_forward(x, original_features, w1, b1, w2, b2,
                          *, compute_dtype=None):
    """x, original_features: [B, H]; w1: [H, 2H]; b1: [H]; w2: [H, H]; b2: [H]
    (PyTorch Linear convention: y = x @ W.T + b)."""
    B, H = x.shape
    assert original_features.shape == (B, H)
    assert w1.shape == (H, 2 * H) and w2.shape == (H, H)

    # bf16 is the preferred compute dtype on v6e/v7x (256-wide bf16 MXU, f32
    # accumulation); keep f32 weights only when accuracy demands it.
    cdt = jnp.dtype(compute_dtype) if compute_dtype is not None else jnp.dtype(w1.dtype)

    # Lane-dense feature dim (pad to a multiple of 128; H=32 -> 128).
    Hp = _round_up(H, _LANE)

    # ---- generation-aware VMEM budget ---------------------------------------
    try:
        vmem_cap = int(pltpu.get_tpu_info().vmem_capacity_bytes)
    except Exception:
        vmem_cap = 64 << 20                     # conservative: v7x per-core VMEM
    vmem_budget = int(vmem_cap * 0.80)          # headroom for compiler scratch

    w_bytes = cdt.itemsize
    x_bytes = jnp.dtype(x.dtype).itemsize
    orig_bytes = w_bytes if w_bytes < jnp.dtype(original_features.dtype).itemsize \
        else jnp.dtype(original_features.dtype).itemsize
    out_bytes = x_bytes

    # Resident (single-buffered) weights + biases.
    resident = 3 * Hp * Hp * w_bytes + 2 * Hp * 4
    # Per batch-row: double-buffered x/orig/out streams + f32 intermediates
    # (h and adaptation) that live in vregs/VMEM during compute.
    per_row = 2 * Hp * (x_bytes + orig_bytes + out_bytes) + 2 * Hp * 4

    if resident + 8 * per_row > vmem_budget:
        # TODO(synk): feature-tiled (K/N grid, pl.when-gated accumulator) kernel
        # for very large hidden_dim; fall back to fused XLA until then.
        h = jnp.maximum(x @ w1[:, :H].T + original_features @ w1[:, H:].T + b1, 0.0)
        return x + 0.1 * (h @ w2.T + b2)

    # ---- batch tile derived from the budget ----------------------------------
    # Aim for ~1-2 MiB per input stream per grid step (per-step overhead is
    # ~0.35 us; tiny tiles are step-overhead bound), capped by what fits VMEM.
    tb_desired = max(256, (1 << 20) // max(1, Hp * x_bytes))
    tb_cap = max(8, (vmem_budget - resident) // per_row)
    if B < 8:
        tb = B                                   # full dim satisfies tiling rule
    else:
        tb = _round8_down(min(B, tb_cap, tb_desired))
        if B >= 16 and tb >= B:
            # Keep >=2 grid steps so "parallel" can shard across both TCs (v7x).
            tb = _round8_down(pl.cdiv(B, 2))
    grid = (pl.cdiv(B, tb),)

    vmem_needed = resident + tb * per_row
    vmem_limit = None
    if vmem_needed > (12 << 20):                 # v5e default scoped limit ~16 MiB
        vmem_limit = min(max(int(vmem_needed * 3 // 2), vmem_needed), vmem_budget)

    # ---- parameter / activation prep (one-time in production) ----------------
    w1x_p, w1o_p, b1_p, w2_p, b2_p = _prep_params(w1, b1, w2, b2, H, Hp, cdt)
    orig_c = original_features
    if cdt.itemsize < jnp.dtype(orig_c.dtype).itemsize:
        orig_c = orig_c.astype(cdt)              # matmul-only operand: ship narrow
    x_p, orig_p = x, orig_c
    if Hp != H:
        x_p = jnp.pad(x_p, ((0, 0), (0, Hp - H)))
        orig_p = jnp.pad(orig_p, ((0, 0), (0, Hp - H)))

    cost = pl.CostEstimate(
        flops=6 * B * Hp * Hp + 4 * B * Hp,
        transcendentals=0,
        bytes_accessed=(3 * Hp * Hp * w_bytes + 2 * Hp * 4
                        + B * Hp * (x_bytes + orig_bytes + out_bytes)),
    )

    def _call(single_buffer_weights):
        wkw = {"pipeline_mode": pl.Buffered(1)} if single_buffer_weights else {}
        row_spec = pl.BlockSpec((tb, Hp), lambda i: (i, 0))
        weight_spec = pl.BlockSpec((Hp, Hp), lambda i: (0, 0), **wkw)
        bias_spec = pl.BlockSpec((1, Hp), lambda i: (0, 0), **wkw)
        return pl.pallas_call(
            meta_learning_kernel,
            out_shape=jax.ShapeDtypeStruct((B, Hp), x.dtype),
            grid=grid,
            in_specs=[row_spec, row_spec,
                      weight_spec, weight_spec, bias_spec,
                      weight_spec, bias_spec],
            out_specs=row_spec,
            compiler_params=pltpu.CompilerParams(
                dimension_semantics=("parallel",),
                vmem_limit_bytes=vmem_limit),
            cost_estimate=cost,
        )(x_p, orig_p, w1x_p, w1o_p, b1_p, w2_p, b2_p)

    try:
        out = _call(True)                        # single-buffered resident weights
    except Exception:
        out = _call(False)                       # fallback: default buffering

    return out[:, :H] if Hp != H else out


def reference_forward(x, original_features, w1, b1, w2, b2):
    combined = jnp.concatenate([x, original_features], axis=-1)
    h = jnp.maximum(combined @ w1.T + b1, 0.0)
    adaptation = h @ w2.T + b2
    return x + 0.1 * adaptation


if __name__ == "__main__":
    B, H = 8, 32  # batch, hidden_dim (small demo shapes)
    key = jax.random.PRNGKey(0)
    kx, ko, kw1, kb1, kw2, kb2 = jax.random.split(key, 6)

    x = jax.random.normal(kx, (B, H), dtype=jnp.float32)
    original_features = jax.random.normal(ko, (B, H), dtype=jnp.float32)

    # Deterministic parameter init (uniform fan-in style, like nn.Linear defaults).
    bound1 = 1.0 / jnp.sqrt(2.0 * H)
    bound2 = 1.0 / jnp.sqrt(1.0 * H)
    w1 = jax.random.uniform(kw1, (H, 2 * H), jnp.float32, -bound1, bound1)
    b1 = jax.random.uniform(kb1, (H,), jnp.float32, -bound1, bound1)
    w2 = jax.random.uniform(kw2, (H, H), jnp.float32, -bound2, bound2)
    b2 = jax.random.uniform(kb2, (H,), jnp.float32, -bound2, bound2)

    ref = reference_forward(x, original_features, w1, b1, w2, b2)

    # Full-precision path (tight tolerance).
    out = jax.block_until_ready(
        meta_learning_forward(x, original_features, w1, b1, w2, b2))
    assert out.shape == (B, H)
    assert jnp.allclose(out, ref, atol=1e-5, rtol=1e-5), "f32 mismatch vs reference"

    # bf16 MXU path (bf16 weights + bf16 orig stream, f32 accumulation/residual).
    out_bf16 = jax.block_until_ready(
        meta_learning_forward(x, original_features, w1, b1, w2, b2,
                              compute_dtype=jnp.bfloat16))
    assert out_bf16.shape == (B, H)
    assert jnp.allclose(out_bf16, ref, atol=5e-2, rtol=5e-2), "bf16 mismatch vs reference"

    print("KERNEL_OK")
</pallas_src>

<mosaic_0001>
module attributes {stable_mosaic.version = 11 : i64} {
  func.func @meta_learning_kernel(%arg0: i32, %arg1: memref<8x128xf32, #tpu.memory_space<vmem>>, %arg2: memref<8x128xf32, #tpu.memory_space<vmem>>, %arg3: memref<128x128xf32, #tpu.memory_space<vmem>>, %arg4: memref<128x128xf32, #tpu.memory_space<vmem>>, %arg5: memref<1x128xf32, #tpu.memory_space<vmem>>, %arg6: memref<128x128xf32, #tpu.memory_space<vmem>>, %arg7: memref<1x128xf32, #tpu.memory_space<vmem>>, %arg8: memref<8x128xf32, #tpu.memory_space<vmem>>) attributes {dimension_semantics = [#tpu.dimension_semantics<parallel>], iteration_bounds = array<i64: 1>, scalar_prefetch = 0 : i64, scratch_operands = 0 : i64, tpu.core_type = #tpu.core_type<tc>, window_params = [{transform_indices = @transform_0, window_bounds = array<i64: 8, 128>}, {transform_indices = @transform_1, window_bounds = array<i64: 8, 128>}, {pipeline_mode = #tpu.pipeline_mode<synchronous>, transform_indices = @transform_2, window_bounds = array<i64: 128, 128>}, {pipeline_mode = #tpu.pipeline_mode<synchronous>, transform_indices = @transform_3, window_bounds = array<i64: 128, 128>}, {pipeline_mode = #tpu.pipeline_mode<synchronous>, transform_indices = @transform_4, window_bounds = array<i64: 1, 128>}, {pipeline_mode = #tpu.pipeline_mode<synchronous>, transform_indices = @transform_5, window_bounds = array<i64: 128, 128>}, {pipeline_mode = #tpu.pipeline_mode<synchronous>, transform_indices = @transform_6, window_bounds = array<i64: 1, 128>}, {transform_indices = @transform_7, window_bounds = array<i64: 8, 128>}]} {
    %c0 = arith.constant 0 : index
    %c0_0 = arith.constant 0 : index
    %0 = vector.load %arg1[%c0, %c0_0] : memref<8x128xf32, #tpu.memory_space<vmem>>, vector<8x128xf32>
    %c0_1 = arith.constant 0 : index
    %c0_2 = arith.constant 0 : index
    %1 = vector.load %arg2[%c0_1, %c0_2] : memref<8x128xf32, #tpu.memory_space<vmem>>, vector<8x128xf32>
    %c0_3 = arith.constant 0 : index
    %c0_4 = arith.constant 0 : index
    %2 = vector.load %arg3[%c0_3, %c0_4] : memref<128x128xf32, #tpu.memory_space<vmem>>, vector<128x128xf32>
    %cst = arith.constant dense<0.000000e+00> : vector<8x128xf32>
    %3 = tpu.matmul %0, %2, %cst {dimension_numbers = #tpu.dot_dimension_numbers<[1], [0], [0], [1], [0, 0, 1, 1], [], []>} : vector<8x128xf32>, vector<128x128xf32>, vector<8x128xf32> -> vector<8x128xf32>
    %c0_5 = arith.constant 0 : index
    %c0_6 = arith.constant 0 : index
    %4 = vector.load %arg4[%c0_5, %c0_6] : memref<128x128xf32, #tpu.memory_space<vmem>>, vector<128x128xf32>
    %cst_7 = arith.constant dense<0.000000e+00> : vector<8x128xf32>
    %5 = tpu.matmul %1, %4, %cst_7 {dimension_numbers = #tpu.dot_dimension_numbers<[1], [0], [0], [1], [0, 0, 1, 1], [], []>} : vector<8x128xf32>, vector<128x128xf32>, vector<8x128xf32> -> vector<8x128xf32>
    %6 = arith.addf %3, %5 : vector<8x128xf32>
    %c0_8 = arith.constant 0 : index
    %c0_9 = arith.constant 0 : index
    %7 = vector.load %arg5[%c0_8, %c0_9] : memref<1x128xf32, #tpu.memory_space<vmem>>, vector<1x128xf32>
    %8 = vector.broadcast %7 : vector<1x128xf32> to vector<8x128xf32>
    %9 = arith.addf %6, %8 : vector<8x128xf32>
    %cst_10 = arith.constant 0.000000e+00 : f32
    %10 = vector.broadcast %cst_10 : f32 to vector<8x128xf32>
    %11 = arith.maximumf %9, %10 : vector<8x128xf32>
    %c0_11 = arith.constant 0 : index
    %c0_12 = arith.constant 0 : index
    %12 = vector.load %arg6[%c0_11, %c0_12] : memref<128x128xf32, #tpu.memory_space<vmem>>, vector<128x128xf32>
    %cst_13 = arith.constant dense<0.000000e+00> : vector<8x128xf32>
    %13 = tpu.matmul %11, %12, %cst_13 {dimension_numbers = #tpu.dot_dimension_numbers<[1], [0], [0], [1], [0, 0, 1, 1], [], []>} : vector<8x128xf32>, vector<128x128xf32>, vector<8x128xf32> -> vector<8x128xf32>
    %c0_14 = arith.constant 0 : index
    %c0_15 = arith.constant 0 : index
    %14 = vector.load %arg7[%c0_14, %c0_15] : memref<1x128xf32, #tpu.memory_space<vmem>>, vector<1x128xf32>
    %15 = vector.broadcast %14 : vector<1x128xf32> to vector<8x128xf32>
    %16 = arith.addf %13, %15 : vector<8x128xf32>
    %cst_16 = arith.constant 1.000000e-01 : f32
    %17 = vector.broadcast %cst_16 : f32 to vector<8x128xf32>
    %18 = arith.mulf %17, %16 : vector<8x128xf32>
    %19 = arith.addf %0, %18 : vector<8x128xf32>
    %c0_17 = arith.constant 0 : index
    %c0_18 = arith.constant 0 : index
    %20 = vector.load %arg8[%c0_17, %c0_18] : memref<8x128xf32, #tpu.memory_space<vmem>>, vector<8x128xf32>
    tpu.vector_store %arg8[%c0_17, %c0_18], %19 {strides = array<i32>} : memref<8x128xf32, #tpu.memory_space<vmem>>, vector<8x128xf32>,
    return
  }
  func.func @transform_0(%arg0: i32) -> (i32, i32) {
    %c0_i32 = arith.constant 0 : i32
    %c0_i32_0 = arith.constant 0 : i32
    return %arg0, %c0_i32 : i32, i32
  }
  func.func @transform_1(%arg0: i32) -> (i32, i32) {
    %c0_i32 = arith.constant 0 : i32
    %c0_i32_0 = arith.constant 0 : i32
    return %arg0, %c0_i32 : i32, i32
  }
  func.func @transform_2(%arg0: i32) -> (i32, i32) {
    %c0_i32 = arith.constant 0 : i32
    %c0_i32_0 = arith.constant 0 : i32
    %c0_i32_1 = arith.constant 0 : i32
    return %c0_i32, %c0_i32_0 : i32, i32
  }
  func.func @transform_3(%arg0: i32) -> (i32, i32) {
    %c0_i32 = arith.constant 0 : i32
    %c0_i32_0 = arith.constant 0 : i32
    %c0_i32_1 = arith.constant 0 : i32
    return %c0_i32, %c0_i32_0 : i32, i32
  }
  func.func @transform_4(%arg0: i32) -> (i32, i32) {
    %c0_i32 = arith.constant 0 : i32
    %c0_i32_0 = arith.constant 0 : i32
    %c0_i32_1 = arith.constant 0 : i32
    return %c0_i32, %c0_i32_0 : i32, i32
  }
  func.func @transform_5(%arg0: i32) -> (i32, i32) {
    %c0_i32 = arith.constant 0 : i32
    %c0_i32_0 = arith.constant 0 : i32
    %c0_i32_1 = arith.constant 0 : i32
    return %c0_i32, %c0_i32_0 : i32, i32
  }
  func.func @transform_6(%arg0: i32) -> (i32, i32) {
    %c0_i32 = arith.constant 0 : i32
    %c0_i32_0 = arith.constant 0 : i32
    %c0_i32_1 = arith.constant 0 : i32
    return %c0_i32, %c0_i32_0 : i32, i32
  }
  func.func @transform_7(%arg0: i32) -> (i32, i32) {
    %c0_i32 = arith.constant 0 : i32
    %c0_i32_0 = arith.constant 0 : i32
    return %arg0, %c0_i32 : i32, i32
  }
}

module attributes {stable_mosaic.version = 11 : i64} {
  func.func @meta_learning_kernel(%arg0: i32, %arg1: memref<8x128xf32, #tpu.memory_space<vmem>>, %arg2: memref<8x128xf32, #tpu.memory_space<vmem>>, %arg3: memref<128x128xf32, #tpu.memory_space<vmem>>, %arg4: memref<128x128xf32, #tpu.memory_space<vmem>>, %arg5: memref<1x128xf32, #tpu.memory_space<vmem>>, %arg6: memref<128x128xf32, #tpu.memory_space<vmem>>, %arg7: memref<1x128xf32, #tpu.memory_space<vmem>>, %arg8: memref<8x128xf32, #tpu.memory_space<vmem>>) attributes {dimension_semantics = [#tpu.dimension_semantics<parallel>], iteration_bounds = array<i64: 1>, scalar_prefetch = 0 : i64, scratch_operands = 0 : i64, tpu.core_type = #tpu.core_type<tc>, window_params = [{transform_indices = @transform_0, window_bounds = array<i64: 8, 128>}, {transform_indices = @transform_1, window_bounds = array<i64: 8, 128>}, {pipeline_mode = #tpu.pipeline_mode<synchronous>, transform_indices = @transform_2, window_bounds = array<i64: 128, 128>}, {pipeline_mode = #tpu.pipeline_mode<synchronous>, transform_indices = @transform_3, window_bounds = array<i64: 128, 128>}, {pipeline_mode = #tpu.pipeline_mode<synchronous>, transform_indices = @transform_4, window_bounds = array<i64: 1, 128>}, {pipeline_mode = #tpu.pipeline_mode<synchronous>, transform_indices = @transform_5, window_bounds = array<i64: 128, 128>}, {pipeline_mode = #tpu.pipeline_mode<synchronous>, transform_indices = @transform_6, window_bounds = array<i64: 1, 128>}, {transform_indices = @transform_7, window_bounds = array<i64: 8, 128>}]} {
    %c0 = arith.constant 0 : index
    %c0_0 = arith.constant 0 : index
    %0 = vector.load %arg1[%c0, %c0_0] : memref<8x128xf32, #tpu.memory_space<vmem>>, vector<8x128xf32>
    %c0_1 = arith.constant 0 : index
    %c0_2 = arith.constant 0 : index
    %1 = vector.load %arg2[%c0_1, %c0_2] : memref<8x128xf32, #tpu.memory_space<vmem>>, vector<8x128xf32>
    %c0_3 = arith.constant 0 : index
    %c0_4 = arith.constant 0 : index
    %2 = vector.load %arg3[%c0_3, %c0_4] : memref<128x128xf32, #tpu.memory_space<vmem>>, vector<128x128xf32>
    %cst = arith.constant dense<0.000000e+00> : vector<8x128xf32>
    %3 = tpu.matmul %0, %2, %cst {dimension_numbers = #tpu.dot_dimension_numbers<[1], [0], [0], [1], [0, 0, 1, 1], [], []>} : vector<8x128xf32>, vector<128x128xf32>, vector<8x128xf32> -> vector<8x128xf32>
    %c0_5 = arith.constant 0 : index
    %c0_6 = arith.constant 0 : index
    %4 = vector.load %arg4[%c0_5, %c0_6] : memref<128x128xf32, #tpu.memory_space<vmem>>, vector<128x128xf32>
    %cst_7 = arith.constant dense<0.000000e+00> : vector<8x128xf32>
    %5 = tpu.matmul %1, %4, %cst_7 {dimension_numbers = #tpu.dot_dimension_numbers<[1], [0], [0], [1], [0, 0, 1, 1], [], []>} : vector<8x128xf32>, vector<128x128xf32>, vector<8x128xf32> -> vector<8x128xf32>
    %6 = arith.addf %3, %5 : vector<8x128xf32>
    %c0_8 = arith.constant 0 : index
    %c0_9 = arith.constant 0 : index
    %7 = vector.load %arg5[%c0_8, %c0_9] : memref<1x128xf32, #tpu.memory_space<vmem>>, vector<1x128xf32>
    %8 = vector.broadcast %7 : vector<1x128xf32> to vector<8x128xf32>
    %9 = arith.addf %6, %8 : vector<8x128xf32>
    %cst_10 = arith.constant 0.000000e+00 : f32
    %10 = vector.broadcast %cst_10 : f32 to vector<8x128xf32>
    %11 = arith.maximumf %9, %10 : vector<8x128xf32>
    %c0_11 = arith.constant 0 : index
    %c0_12 = arith.constant 0 : index
    %12 = vector.load %arg6[%c0_11, %c0_12] : memref<128x128xf32, #tpu.memory_space<vmem>>, vector<128x128xf32>
    %cst_13 = arith.constant dense<0.000000e+00> : vector<8x128xf32>
    %13 = tpu.matmul %11, %12, %cst_13 {dimension_numbers = #tpu.dot_dimension_numbers<[1], [0], [0], [1], [0, 0, 1, 1], [], []>} : vector<8x128xf32>, vector<128x128xf32>, vector<8x128xf32> -> vector<8x128xf32>
    %c0_14 = arith.constant 0 : index
    %c0_15 = arith.constant 0 : index
    %14 = vector.load %arg7[%c0_14, %c0_15] : memref<1x128xf32, #tpu.memory_space<vmem>>, vector<1x128xf32>
    %15 = vector.broadcast %14 : vector<1x128xf32> to vector<8x128xf32>
    %16 = arith.addf %13, %15 : vector<8x128xf32>
    %cst_16 = arith.constant 1.000000e-01 : f32
    %17 = vector.broadcast %cst_16 : f32 to vector<8x128xf32>
    %18 = arith.mulf %17, %16 : vector<8x128xf32>
    %19 = arith.addf %0, %18 : vector<8x128xf32>
    %c0_17 = arith.constant 0 : index
    %c0_18 = arith.constant 0 : index
    %20 = vector.load %arg8[%c0_17, %c0_18] : memref<8x128xf32, #tpu.memory_space<vmem>>, vector<8x128xf32>
    tpu.vector_store %arg8[%c0_17, %c0_18], %19 {strides = array<i32>} : memref<8x128xf32, #tpu.memory_space<vmem>>, vector<8x128xf32>,
    return
  }
  func.func @transform_0(%arg0: i32) -> (i32, i32) {
    %c0_i32 = arith.constant 0 : i32
    %c0_i32_0 = arith.constant 0 : i32
    return %arg0, %c0_i32 : i32, i32
  }
  func.func @transform_1(%arg0: i32) -> (i32, i32) {
    %c0_i32 = arith.constant 0 : i32
    %c0_i32_0 = arith.constant 0 : i32
    return %arg0, %c0_i32 : i32, i32
  }
  func.func @transform_2(%arg0: i32) -> (i32, i32) {
    %c0_i32 = arith.constant 0 : i32
    %c0_i32_0 = arith.constant 0 : i32
    %c0_i32_1 = arith.constant 0 : i32
    return %c0_i32, %c0_i32_0 : i32, i32
  }
  func.func @transform_3(%arg0: i32) -> (i32, i32) {
    %c0_i32 = arith.constant 0 : i32
    %c0_i32_0 = arith.constant 0 : i32
    %c0_i32_1 = arith.constant 0 : i32
    return %c0_i32, %c0_i32_0 : i32, i32
  }
  func.func @transform_4(%arg0: i32) -> (i32, i32) {
    %c0_i32 = arith.constant 0 : i32
    %c0_i32_0 = arith.constant 0 : i32
    %c0_i32_1 = arith.constant 0 : i32
    return %c0_i32, %c0_i32_0 : i32, i32
  }
  func.func @transform_5(%arg0: i32) -> (i32, i32) {
    %c0_i32 = arith.constant 0 : i32
    %c0_i32_0 = arith.constant 0 : i32
    %c0_i32_1 = arith.constant 0 : i32
    return %c0_i32, %c0_i32_0 : i32, i32
  }
  func.func @transform_6(%arg0: i32) -> (i32, i32) {
    %c0_i32 = arith.constant 0 : i32
    %c0_i32_0 = arith.constant 0 : i32
    %c0_i32_1 = arith.constant 0 : i32
    return %c0_i32, %c0_i32_0 : i32, i32
  }
  func.func @transform_7(%arg0: i32) -> (i32, i32) {
    %c0_i32 = arith.constant 0 : i32
    %c0_i32_0 = arith.constant 0 : i32
    return %arg0, %c0_i32 : i32, i32
  }
}

</mosaic_0001>

<bundles_post_ra>
// kernel: tpu_custom_call.1
= control target key start
LH: loop header
LB: loop body
LE: loop exit
PB: predicated region body
PF: predicated region fallthrough
CT: control target
= control target key end

     0   :  { %12 = vsyncpa [#allocation3], 0  ;;  %s936_s0 = inlined_call_operand.hbm [shape: f32[8,128], index: 0, kind: input, shape index: {}]   ;;  %s937_s1 = inlined_call_operand.hbm [shape: f32[8,128], index: 1, kind: input, shape index: {}]   ;;  %s938_s2 = inlined_call_operand.hbm [shape: f32[128,128], index: 2, kind: input, shape index: {}]   ;;  %s939_s3 = inlined_call_operand.hbm [shape: f32[128,128], index: 3, kind: input, shape index: {}]   ;;  %s940_s4 = inlined_call_operand.vmem [shape: f32[1,128], index: 4, kind: input, shape index: {}]   ;;  %s941_s5 = inlined_call_operand.hbm [shape: f32[128,128], index: 5, kind: input, shape index: {}]   ;;  %s942_s6 = inlined_call_operand.vmem [shape: f32[1,128], index: 6, kind: input, shape index: {}]   ;;  %s943_s7 = inlined_call_operand.hbm [shape: f32[8,128], index: 7, kind: output, shape index: {}]  }
   0x1   :  { %13 = vsyncpa [#allocation6], 0 }
   0x2   :  { %14 = vsyncpa [#allocation9], 0 }
   0x3   :  { %15 = vsyncpa [#allocation4], 0  ;;  %s768_s24 = smov [#allocation5]   ;;  %s628_s28 = scalar_lea.hbm %s937_s1, 128 }
   0x4   :  { %s32_s25 = sshll.u32 %s768_s24, 4  ;;  %p629_p0 = scmp.ne.s32.totalorder %s937_s1, %s628_s28  ;;  %s33_s25 = int_to_ptr.vmem [resolvable:$true] %s32_s25 }
   0x5   :  { %p632_p1 = scmp.lt.u32.totalorder %s628_s28, %s937_s1 }
   0x7   :  { %p634_p2 = pnand %p632_p1, %p629_p0 }
   0x9   :  { %637 = shalt.err (!%p634_p2)
}
   0xa   :  { %s638_s10 = scalar_lea.vmem %s33_s25, 128  ;;  %p643_p4 = scmp.lt.s32.totalorder %s33_s25, %s33_s25 }
   0xb   :  { %p639_p3 = scmp.ne.s32.totalorder %s33_s25, %s638_s10  ;;  %p644_p5 = scmp.lt.s32.totalorder %s638_s10, %s638_s10 }
   0xd   :  { %p645_p6 = por %p644_p5, %p643_p4 }
   0xf   :  { %p646_p7 = pnand %p645_p6, %p639_p3 }
  0x11   :  { %649 = shalt.err (!%p646_p7)
}
  0x12   :  { %35 = dma.hbm_to_vmem [thread:$0]  %s937_s1, 128, %s33_s25, [#allocation6]  }
  0x13   :  { %s769_s13 = smov [#allocation8]   ;;  %s770_s15 = smov [#allocation2]  }
  0x14   :  { %s53_s14 = sshll.u32 %s769_s13, 4  ;;  %s22_s16 = sshll.u32 %s770_s15, 4  ;;  %s54_s14 = int_to_ptr.vmem [resolvable:$true] %s53_s14  ;;  %s23_s16 = int_to_ptr.vmem [resolvable:$true] %s22_s16 }
  0x15   :  { %s650_s19 = scalar_lea.hbm %s939_s3, 2048 }
  0x16   :  { %p651_p8 = scmp.ne.s32.totalorder %s939_s3, %s650_s19  ;;  %p654_p9 = scmp.lt.u32.totalorder %s650_s19, %s939_s3 }
  0x18   :  { %p656_p10 = pnand %p654_p9, %p651_p8 }
  0x1a   :  { %659 = shalt.err (!%p656_p10)
}
  0x1b   :  { %s660_s1 = scalar_lea.vmem %s54_s14, 2048  ;;  %p665_p12 = scmp.lt.s32.totalorder %s54_s14, %s54_s14 }
  0x1c   :  { %p661_p11 = scmp.ne.s32.totalorder %s54_s14, %s660_s1  ;;  %p666_p13 = scmp.lt.s32.totalorder %s660_s1, %s660_s1 }
  0x1e   :  { %p667_p0 = por %p666_p13, %p665_p12 }
  0x20   :  { %p668_p1 = pnand %p667_p0, %p661_p11 }
  0x22   :  { %671 = shalt.err (!%p668_p1)
}
  0x23   :  { %s771_s24 = smov 128   ;;  %s772_s25 = smov 8  }
  0x24   :  { %59 = dma.hbm_to_vmem [thread:$0]  %s939_s3, 2048, %s54_s14, [#allocation9], %s771_s24, %s771_s24, %s772_s25  }
  0x25   :  { %s672_s30 = scalar_lea.hbm %s936_s0, 128 }
  0x26   :  { %p673_p2 = scmp.ne.s32.totalorder %s936_s0, %s672_s30  ;;  %p676_p3 = scmp.lt.u32.totalorder %s672_s30, %s936_s0 }
  0x28   :  { %p678_p4 = pnand %p676_p3, %p673_p2 }
  0x2a   :  { %681 = shalt.err (!%p678_p4)
}
  0x2b   :  { %s682_s12 = scalar_lea.vmem %s23_s16, 128  ;;  %p687_p6 = scmp.lt.s32.totalorder %s23_s16, %s23_s16 }
  0x2c   :  { %p683_p5 = scmp.ne.s32.totalorder %s23_s16, %s682_s12  ;;  %p688_p7 = scmp.lt.s32.totalorder %s682_s12, %s682_s12 }
  0x2e   :  { %p689_p8 = por %p688_p7, %p687_p6 }
  0x30   :  { %p690_p9 = pnand %p689_p8, %p683_p5 }
  0x32   :  { %693 = shalt.err (!%p690_p9)
}
  0x33   :  { %25 = dma.hbm_to_vmem [thread:$0]  %s936_s0, 128, %s23_s16, [#allocation3]  }
  0x34   :  { %s773_s14 = smov [#allocation7]   ;;  %s774_s17 = smov [#allocation10]  }
  0x35   :  { %s41_s15 = sshll.u32 %s773_s14, 4  ;;  %s67_s18 = sshll.u32 %s774_s17, 4  ;;  %s42_s15 = int_to_ptr.vmem [resolvable:$true] %s41_s15  ;;  %s68_s18 = int_to_ptr.vmem [resolvable:$true] %s67_s18 }
  0x36   :  { %s694_s21 = scalar_lea.hbm %s938_s2, 2048 }
  0x37   :  { %p695_p10 = scmp.ne.s32.totalorder %s938_s2, %s694_s21  ;;  %p698_p11 = scmp.lt.u32.totalorder %s694_s21, %s938_s2 }
  0x39   :  { %p700_p12 = pnand %p698_p11, %p695_p10 }
  0x3b   :  { %703 = shalt.err (!%p700_p12)
}
  0x3c   :  { %s704_s0 = scalar_lea.vmem %s42_s15, 2048  ;;  %p709_p0 = scmp.lt.s32.totalorder %s42_s15, %s42_s15 }
  0x3d   :  { %p705_p13 = scmp.ne.s32.totalorder %s42_s15, %s704_s0  ;;  %p710_p1 = scmp.lt.s32.totalorder %s704_s0, %s704_s0 }
  0x3f   :  { %p711_p2 = por %p710_p1, %p709_p0 }
  0x41   :  { %p712_p3 = pnand %p711_p2, %p705_p13 }
  0x43   :  { %715 = shalt.err (!%p712_p3)
}
  0x44   :  { %47 = dma.hbm_to_vmem [thread:$0]  %s938_s2, 2048, %s42_s15, [#allocation6], %s771_s24, %s771_s24, %s772_s25  }
  0x45   :  { %s716_s30 = scalar_lea.hbm %s941_s5, 2048 }
  0x46   :  { %p717_p4 = scmp.ne.s32.totalorder %s941_s5, %s716_s30  ;;  %p720_p5 = scmp.lt.u32.totalorder %s716_s30, %s941_s5 }
  0x48   :  { %p722_p6 = pnand %p720_p5, %p717_p4 }
  0x4a   :  { %725 = shalt.err (!%p722_p6)
}
  0x4b   :  { %s726_s12 = scalar_lea.vmem %s68_s18, 2048  ;;  %p731_p8 = scmp.lt.s32.totalorder %s68_s18, %s68_s18 }
  0x4c   :  { %p727_p7 = scmp.ne.s32.totalorder %s68_s18, %s726_s12  ;;  %p732_p9 = scmp.lt.s32.totalorder %s726_s12, %s726_s12 }
  0x4e   :  { %p733_p10 = por %p732_p9, %p731_p8 }
  0x50   :  { %p734_p11 = pnand %p733_p10, %p727_p7 }
  0x52   :  { %737 = shalt.err (!%p734_p11)
}
  0x53   :  { %73 = dma.hbm_to_vmem [thread:$0]  %s941_s5, 2048, %s68_s18, [#allocation9], %s771_s24, %s771_s24, %s772_s25  }
  0x54   :  { %760 = dma.done.wait [#allocation3], 128  }
  0x55   :  { %761 = vsyncadd [#allocation3], 4294967168 }
  0x56   :  { %762 = dma.done.wait [#allocation6], 2176  }
  0x57   :  { %763 = vsyncadd [#allocation6], 4294965120 }
  0x58   :  { %764 = dma.done.wait [#allocation9], 4096  }
  0x59   :  { %765 = vsyncadd [#allocation9], 4294963200  ;;  %v775_v0 = vmov 0.0|0.0   ;;  %vm776_vm0 = vmmov 0   ;;  %v777_v1 = vmov 0.0   ;;  %v109_v2 = vld [vmem:[#allocation8] sm:$0xff] }
  0x5a   :  { %545 = vmatprep.subr.bf16.mxu0 %v775_v0  ;;  %569 = vmatprep.subr.bf16.mxu1 %v775_v0  ;;  %v110_v3 = vld [vmem:[#allocation8 + $0x8] sm:$0xff]  ;;  %v93_v4 = vld [vmem:[#allocation7] sm:$0xff]  ;;  %v111_v7 = vld [vmem:[#allocation8 + $0x10] sm:$0xff]  ;;  %s778_s14 = smov [#allocation11]  }
  0x5b   :  { %472 = vmatprep.mubr.msk.f32.mxu0 %vm776_vm0, %v777_v1  ;;  %507 = vmatprep.mubr.msk.f32.mxu1 %vm776_vm0, %v777_v1  ;;  %v546_v5 = vpack.c.bf16 %v110_v3, %v109_v2  ;;  %v94_v6 = vld [vmem:[#allocation7 + $0x8] sm:$0xff]  ;;  %v112_v8 = vld [vmem:[#allocation8 + $0x18] sm:$0xff]  ;;  %v95_v10 = vld [vmem:[#allocation7 + $0x10] sm:$0xff]  ;;  %s376_s15 = sshll.u32 %s778_s14, 4  ;;  %s377_s15 = int_to_ptr.vmem [resolvable:$true] %s376_s15 }
  0x5c   :  { %v570_v9 = vpack.c.bf16 %v94_v6, %v93_v4  ;;  %v96_v11 = vld [vmem:[#allocation7 + $0x18] sm:$0xff]  ;;  %v549_v12 = vpack.c.bf16 %v112_v8, %v111_v7  ;;  %v113_v14 = vld [vmem:[#allocation8 + $0x20] sm:$0xff]  ;;  %v114_v15 = vld [vmem:[#allocation8 + $0x28] sm:$0xff]  ;;  %p743_p13 = scmp.lt.s32.totalorder %s377_s15, %s377_s15 }
  0x5d   :  { %547 = vmatpush3.bf16.msra.mxu0 %v546_v5  ;;  %v573_v13 = vpack.c.bf16 %v96_v11, %v95_v10  ;;  %v97_v16 = vld [vmem:[#allocation7 + $0x20] sm:$0xff]  ;;  %v98_v17 = vld [vmem:[#allocation7 + $0x28] sm:$0xff]  ;;  %v552_v18 = vpack.c.bf16 %v114_v15, %v113_v14  ;;  %v115_v20 = vld [vmem:[#allocation8 + $0x30] sm:$0xff] }
  0x5e   :  { %571 = vmatpush3.bf16.msra.mxu1 %v570_v9  ;;  %548 = vmatprep.subr.bf16.mxu0 %v775_v0  ;;  %v576_v19 = vpack.c.bf16 %v98_v17, %v97_v16  ;;  %v116_v21 = vld [vmem:[#allocation8 + $0x38] sm:$0xff]  ;;  %v99_v22 = vld [vmem:[#allocation7 + $0x30] sm:$0xff]  ;;  %v117_v26 = vld [vmem:[#allocation8 + $0x40] sm:$0xff] }
  0x5f   :  { %572 = vmatprep.subr.bf16.mxu1 %v775_v0  ;;  %v100_v23 = vld [vmem:[#allocation7 + $0x38] sm:$0xff]  ;;  %v555_v24 = vpack.c.bf16 %v116_v21, %v115_v20  ;;  %v118_v27 = vld [vmem:[#allocation8 + $0x48] sm:$0xff]  ;;  %v101_v28 = vld [vmem:[#allocation7 + $0x40] sm:$0xff] }
  0x60   :  { %v579_v25 = vpack.c.bf16 %v100_v23, %v99_v22  ;;  %v102_v29 = vld [vmem:[#allocation7 + $0x48] sm:$0xff]  ;;  %v558_v30 = vpack.c.bf16 %v118_v27, %v117_v26  ;;  %v119_v32 = vld [vmem:[#allocation8 + $0x50] sm:$0xff]  ;;  %v120_v33 = vld [vmem:[#allocation8 + $0x58] sm:$0xff] }
  0x61   :  { %550 = vmatpush3.bf16.msra.mxu0 %v549_v12  ;;  %v582_v31 = vpack.c.bf16 %v102_v29, %v101_v28  ;;  %v103_v34 = vld [vmem:[#allocation7 + $0x50] sm:$0xff]  ;;  %v104_v35 = vld [vmem:[#allocation7 + $0x58] sm:$0xff]  ;;  %v561_v36 = vpack.c.bf16 %v120_v33, %v119_v32  ;;  %v121_v38 = vld [vmem:[#allocation8 + $0x60] sm:$0xff] }
  0x62   :  { %574 = vmatpush3.bf16.msra.mxu1 %v573_v13  ;;  %551 = vmatprep.subr.bf16.mxu0 %v775_v0  ;;  %v585_v37 = vpack.c.bf16 %v104_v35, %v103_v34  ;;  %v122_v39 = vld [vmem:[#allocation8 + $0x68] sm:$0xff]  ;;  %v105_v40 = vld [vmem:[#allocation7 + $0x60] sm:$0xff]  ;;  %v123_v44 = vld [vmem:[#allocation8 + $0x70] sm:$0xff] }
  0x63   :  { %575 = vmatprep.subr.bf16.mxu1 %v775_v0  ;;  %v106_v41 = vld [vmem:[#allocation7 + $0x68] sm:$0xff]  ;;  %v564_v42 = vpack.c.bf16 %v122_v39, %v121_v38  ;;  %v124_v45 = vld [vmem:[#allocation8 + $0x78] sm:$0xff]  ;;  %v107_v46 = vld [vmem:[#allocation7 + $0x70] sm:$0xff] }
  0x64   :  { %v588_v43 = vpack.c.bf16 %v106_v41, %v105_v40  ;;  %v108_v47 = vld [vmem:[#allocation7 + $0x78] sm:$0xff]  ;;  %v567_v48 = vpack.c.bf16 %v124_v45, %v123_v44  ;;  %v274_v50 = vld [vmem:[#allocation10] sm:$0xff]  ;;  %v275_v51 = vld [vmem:[#allocation10 + $0x8] sm:$0xff] }
  0x65   :  { %553 = vmatpush3.bf16.msra.mxu0 %v552_v18  ;;  %v591_v49 = vpack.c.bf16 %v108_v47, %v107_v46  ;;  %v92_v52 = vld [vmem:[#allocation5] sm:$0xff]  ;;  %v594_v53 = vpack.c.bf16 %v275_v51, %v274_v50  ;;  %v91_v54 = vld [vmem:[#allocation2] sm:$0xff]  ;;  %v278_v58 = vld [vmem:[#allocation10 + $0x20] sm:$0xff] }
  0x66   :  { %577 = vmatpush3.bf16.msra.mxu1 %v576_v19  ;;  %554 = vmatprep.subr.bf16.mxu0 %v775_v0  ;;  %v276_v55 = vld [vmem:[#allocation10 + $0x10] sm:$0xff]  ;;  %v277_v56 = vld [vmem:[#allocation10 + $0x18] sm:$0xff]  ;;  %v279_v59 = vld [vmem:[#allocation10 + $0x28] sm:$0xff] }
  0x67   :  { %578 = vmatprep.subr.bf16.mxu1 %v775_v0  ;;  %v597_v57 = vpack.c.bf16 %v277_v56, %v276_v55  ;;  %v600_v60 = vpack.c.bf16 %v279_v59, %v278_v58  ;;  %v280_v61 = vld [vmem:[#allocation10 + $0x30] sm:$0xff]  ;;  %v281_v62 = vld [vmem:[#allocation10 + $0x38] sm:$0xff]  ;;  %v282_v2 = vld [vmem:[#allocation10 + $0x40] sm:$0xff] }
  0x68   :  { %v603_v63 = vpack.c.bf16 %v281_v62, %v280_v61  ;;  %v283_v3 = vld [vmem:[#allocation10 + $0x48] sm:$0xff]  ;;  %v284_v5 = vld [vmem:[#allocation10 + $0x50] sm:$0xff]  ;;  %v285_v6 = vld [vmem:[#allocation10 + $0x58] sm:$0xff] }
  0x69   :  { %556 = vmatpush3.bf16.msra.mxu0 %v555_v24  ;;  %v606_v4 = vpack.c.bf16 %v283_v3, %v282_v2  ;;  %v286_v7 = vld [vmem:[#allocation10 + $0x60] sm:$0xff]  ;;  %v287_v8 = vld [vmem:[#allocation10 + $0x68] sm:$0xff]  ;;  %v288_v10 = vld [vmem:[#allocation10 + $0x70] sm:$0xff] }
  0x6a   :  { %580 = vmatpush3.bf16.msra.mxu1 %v579_v25  ;;  %557 = vmatprep.subr.bf16.mxu0 %v775_v0  ;;  %v612_v9 = vpack.c.bf16 %v287_v8, %v286_v7  ;;  %v289_v11 = vld [vmem:[#allocation10 + $0x78] sm:$0xff]  ;;  %v387_v15 = vld [vmem:[%s940_s4] ss:$0 sm:$0xff]  ;;  %s738_s4 = scalar_lea.vmem %s377_s15, 128 }
  0x6b   :  { %581 = vmatprep.subr.bf16.mxu1 %v775_v0  ;;  %v615_v12 = vpack.c.bf16 %v289_v11, %v288_v10  ;;  %p739_p12 = scmp.ne.s32.totalorder %s377_s15, %s738_s4  ;;  %p744_p0 = scmp.lt.s32.totalorder %s738_s4, %s738_s4 }
  0x6d   :  { %559 = vmatpush3.bf16.msra.mxu0 %v558_v30  ;;  %p745_p1 = por %p744_p0, %p743_p13 }
  0x6e   :  { %583 = vmatpush3.bf16.msra.mxu1 %v582_v31  ;;  %560 = vmatprep.subr.bf16.mxu0 %v775_v0 }
  0x6f   :  { %584 = vmatprep.subr.bf16.mxu1 %v775_v0  ;;  %p746_p2 = pnand %p745_p1, %p739_p12 }
  0x71   :  { %562 = vmatpush3.bf16.msra.mxu0 %v561_v36 }
  0x72   :  { %586 = vmatpush3.bf16.msra.mxu1 %v585_v37  ;;  %563 = vmatprep.subr.bf16.mxu0 %v775_v0 }
  0x73   :  { %587 = vmatprep.subr.bf16.mxu1 %v775_v0 }
  0x75   :  { %565 = vmatpush3.bf16.msra.mxu0 %v564_v42 }
  0x76   :  { %589 = vmatpush3.bf16.msra.mxu1 %v588_v43  ;;  %566 = vmatprep.subr.bf16.mxu0 %v775_v0 }
  0x77   :  { %590 = vmatprep.subr.bf16.mxu1 %v775_v0 }
  0x79   :  { %568 = vmatpush3.bf16.msra.mxu0 %v567_v48 }
  0x7a   :  { %592 = vmatpush3.bf16.msra.mxu1 %v591_v49  ;;  %593 = vmatprep.subr.bf16.mxu0 %v775_v0 }
  0x7c   :  { %473 = vmatmul.mubr.f32.vlgmr.msra.gmra.mrb[0].mxu0 %v92_v52 }
  0x7d   :  { %508 = vmatmul.mubr.f32.vlgmr.msra.gmra.mrb[0].mxu1 %v91_v54  ;;  %595 = vmatpush3.bf16.msra.mxu0 %v594_v53 }
  0x7e   :  { %596 = vmatprep.subr.bf16.mxu0 %v775_v0  ;;  %542 = vmatprep.mubr.msk.f32.mxu0 %vm776_vm0, %v777_v1  ;;  %v609_v1 = vpack.c.bf16 %v285_v6, %v284_v5 }
  0x81   :  { %598 = vmatpush3.bf16.msra.mxu0 %v597_v57 }
  0x82   :  { %599 = vmatprep.subr.bf16.mxu0 %v775_v0 }
  0x85   :  { %601 = vmatpush3.bf16.msra.mxu0 %v600_v60 }
  0x86   :  { %602 = vmatprep.subr.bf16.mxu0 %v775_v0 }
  0x89   :  { %604 = vmatpush3.bf16.msra.mxu0 %v603_v63 }
  0x8a   :  { %605 = vmatprep.subr.bf16.mxu0 %v775_v0 }
  0x8d   :  { %607 = vmatpush3.bf16.msra.mxu0 %v606_v4 }
  0x8e   :  { %608 = vmatprep.subr.bf16.mxu0 %v775_v0 }
  0x91   :  { %610 = vmatpush3.bf16.msra.mxu0 %v609_v1 }
  0x92   :  { %611 = vmatprep.subr.bf16.mxu0 %v775_v0 }
  0x95   :  { %613 = vmatpush3.bf16.msra.mxu0 %v612_v9 }
  0x96   :  { %614 = vmatprep.subr.bf16.mxu0 %v775_v0  ;;  %v388_v0 = vld [vmem:[%s942_s6] ss:$0 sm:$0xff] }
  0x99   :  { %616 = vmatpush3.bf16.msra.mxu0 %v615_v12 }
 0x14f   :  { %v191_v13 = vpop.f32.mrb[0].mxu0 }
 0x150   :  { %v261_v14 = vpop.f32.mrb[0].mxu1  ;;  %v474_v16 = vpop.f32.mrb[1].mxu0 }
 0x151   :  { %v262_v17 = vadd.f32 %v261_v14, %v191_v13  ;;  %v509_v18 = vpop.f32.mrb[1].mxu1 }
 0x153   :  { %v272_v19 = vadd.f32 %v387_v15, %v262_v17 }
 0x155   :  { %v273_v20 = vmax.f32 %v272_v19, 0.0 }
 0x157   :  { %543 = vmatmul.mubr.f32.vlgmr.msra.gmra.mrb[2].mxu0 %v273_v20 }
 0x22a   :  { %v363_v21 = vpop.f32.mrb[2].mxu0 }
 0x22b   :  { %v364_v22 = vadd.f32 %v388_v0, %v363_v21  ;;  %v544_v23 = vpop.f32.mrb[3].mxu0 }
 0x22d   :  { %v367_v24 = vmul.f32 0.1, %v364_v22 }
 0x22f   :  { %v368_v25 = vadd.f32 %v367_v24, %v91_v54 }
 0x231   :  { %369 = vst [vmem:[#allocation11] sm:$0xff] %v368_v25 }
 0x232   :  { %749 = shalt.err (!%p746_p2)
}
 0x233   :  { %s750_s6 = scalar_lea.hbm %s943_s7, 128 }
 0x234   :  { %p751_p3 = scmp.ne.s32.totalorder %s943_s7, %s750_s6  ;;  %p754_p4 = scmp.lt.u32.totalorder %s750_s6, %s943_s7 }
 0x236   :  { %p756_p5 = pnand %p754_p4, %p751_p3 }
 0x238   :  { %759 = shalt.err (!%p756_p5)
}
 0x239   :  { %379 = dma.vmem_to_hbm [thread:$0]  %s377_s15, 128, %s943_s7, [#allocation4]  }
 0x23a   :  { %766 = dma.done.wait [#allocation4], 128  }
 0x23b   :  { %767 = vsyncadd [#allocation4], 4294967168 }
 0x23c   :  { %383 = vsyncpa [#allocation3], 1 }
 0x23d   :  { %384 = vsyncpa [#allocation6], 1 }
 0x23e   :  { %385 = vsyncpa [#allocation9], 1 }
 0x23f   :  { %386 = vsyncpa [#allocation4], 1 }

// kernel: tpu_custom_call.1
= control target key start
LH: loop header
LB: loop body
LE: loop exit
PB: predicated region body
PF: predicated region fallthrough
CT: control target
= control target key end

     0   :  { %12 = vsyncpa [#allocation3], 0  ;;  %s936_s0 = inlined_call_operand.hbm [shape: f32[8,128], index: 0, kind: input, shape index: {}]   ;;  %s937_s1 = inlined_call_operand.hbm [shape: f32[8,128], index: 1, kind: input, shape index: {}]   ;;  %s938_s2 = inlined_call_operand.hbm [shape: f32[128,128], index: 2, kind: input, shape index: {}]   ;;  %s939_s3 = inlined_call_operand.hbm [shape: f32[128,128], index: 3, kind: input, shape index: {}]   ;;  %s940_s4 = inlined_call_operand.vmem [shape: f32[1,128], index: 4, kind: input, shape index: {}]   ;;  %s941_s5 = inlined_call_operand.hbm [shape: f32[128,128], index: 5, kind: input, shape index: {}]   ;;  %s942_s6 = inlined_call_operand.vmem [shape: f32[1,128], index: 6, kind: input, shape index: {}]   ;;  %s943_s7 = inlined_call_operand.hbm [shape: f32[8,128], index: 7, kind: output, shape index: {}]  }
   0x1   :  { %13 = vsyncpa [#allocation6], 0 }
   0x2   :  { %14 = vsyncpa [#allocation9], 0 }
   0x3   :  { %15 = vsyncpa [#allocation4], 0  ;;  %s768_s24 = smov [#allocation5]   ;;  %s628_s28 = scalar_lea.hbm %s937_s1, 128 }
   0x4   :  { %s32_s25 = sshll.u32 %s768_s24, 4  ;;  %p629_p0 = scmp.ne.s32.totalorder %s937_s1, %s628_s28  ;;  %s33_s25 = int_to_ptr.vmem [resolvable:$true] %s32_s25 }
   0x5   :  { %p632_p1 = scmp.lt.u32.totalorder %s628_s28, %s937_s1 }
   0x7   :  { %p634_p2 = pnand %p632_p1, %p629_p0 }
   0x9   :  { %637 = shalt.err (!%p634_p2)
}
   0xa   :  { %s638_s10 = scalar_lea.vmem %s33_s25, 128  ;;  %p643_p4 = scmp.lt.s32.totalorder %s33_s25, %s33_s25 }
   0xb   :  { %p639_p3 = scmp.ne.s32.totalorder %s33_s25, %s638_s10  ;;  %p644_p5 = scmp.lt.s32.totalorder %s638_s10, %s638_s10 }
   0xd   :  { %p645_p6 = por %p644_p5, %p643_p4 }
   0xf   :  { %p646_p7 = pnand %p645_p6, %p639_p3 }
  0x11   :  { %649 = shalt.err (!%p646_p7)
}
  0x12   :  { %35 = dma.hbm_to_vmem [thread:$0]  %s937_s1, 128, %s33_s25, [#allocation6]  }
  0x13   :  { %s769_s13 = smov [#allocation8]   ;;  %s770_s15 = smov [#allocation2]  }
  0x14   :  { %s53_s14 = sshll.u32 %s769_s13, 4  ;;  %s22_s16 = sshll.u32 %s770_s15, 4  ;;  %s54_s14 = int_to_ptr.vmem [resolvable:$true] %s53_s14  ;;  %s23_s16 = int_to_ptr.vmem [resolvable:$true] %s22_s16 }
  0x15   :  { %s650_s19 = scalar_lea.hbm %s939_s3, 2048 }
  0x16   :  { %p651_p8 = scmp.ne.s32.totalorder %s939_s3, %s650_s19  ;;  %p654_p9 = scmp.lt.u32.totalorder %s650_s19, %s939_s3 }
  0x18   :  { %p656_p10 = pnand %p654_p9, %p651_p8 }
  0x1a   :  { %659 = shalt.err (!%p656_p10)
}
  0x1b   :  { %s660_s1 = scalar_lea.vmem %s54_s14, 2048  ;;  %p665_p12 = scmp.lt.s32.totalorder %s54_s14, %s54_s14 }
  0x1c   :  { %p661_p11 = scmp.ne.s32.totalorder %s54_s14, %s660_s1  ;;  %p666_p13 = scmp.lt.s32.totalorder %s660_s1, %s660_s1 }
  0x1e   :  { %p667_p0 = por %p666_p13, %p665_p12 }
  0x20   :  { %p668_p1 = pnand %p667_p0, %p661_p11 }
  0x22   :  { %671 = shalt.err (!%p668_p1)
}
  0x23   :  { %s771_s24 = smov 128   ;;  %s772_s25 = smov 8  }
  0x24   :  { %59 = dma.hbm_to_vmem [thread:$0]  %s939_s3, 2048, %s54_s14, [#allocation9], %s771_s24, %s771_s24, %s772_s25  }
  0x25   :  { %s672_s30 = scalar_lea.hbm %s936_s0, 128 }
  0x26   :  { %p673_p2 = scmp.ne.s32.totalorder %s936_s0, %s672_s30  ;;  %p676_p3 = scmp.lt.u32.totalorder %s672_s30, %s936_s0 }
  0x28   :  { %p678_p4 = pnand %p676_p3, %p673_p2 }
  0x2a   :  { %681 = shalt.err (!%p678_p4)
}
  0x2b   :  { %s682_s12 = scalar_lea.vmem %s23_s16, 128  ;;  %p687_p6 = scmp.lt.s32.totalorder %s23_s16, %s23_s16 }
  0x2c   :  { %p683_p5 = scmp.ne.s32.totalorder %s23_s16, %s682_s12  ;;  %p688_p7 = scmp.lt.s32.totalorder %s682_s12, %s682_s12 }
  0x2e   :  { %p689_p8 = por %p688_p7, %p687_p6 }
  0x30   :  { %p690_p9 = pnand %p689_p8, %p683_p5 }
  0x32   :  { %693 = shalt.err (!%p690_p9)
}
  0x33   :  { %25 = dma.hbm_to_vmem [thread:$0]  %s936_s0, 128, %s23_s16, [#allocation3]  }
  0x34   :  { %s773_s14 = smov [#allocation7]   ;;  %s774_s17 = smov [#allocation10]  }
  0x35   :  { %s41_s15 = sshll.u32 %s773_s14, 4  ;;  %s67_s18 = sshll.u32 %s774_s17, 4  ;;  %s42_s15 = int_to_ptr.vmem [resolvable:$true] %s41_s15  ;;  %s68_s18 = int_to_ptr.vmem [resolvable:$true] %s67_s18 }
  0x36   :  { %s694_s21 = scalar_lea.hbm %s938_s2, 2048 }
  0x37   :  { %p695_p10 = scmp.ne.s32.totalorder %s938_s2, %s694_s21  ;;  %p698_p11 = scmp.lt.u32.totalorder %s694_s21, %s938_s2 }
  0x39   :  { %p700_p12 = pnand %p698_p11, %p695_p10 }
  0x3b   :  { %703 = shalt.err (!%p700_p12)
}
  0x3c   :  { %s704_s0 = scalar_lea.vmem %s42_s15, 2048  ;;  %p709_p0 = scmp.lt.s32.totalorder %s42_s15, %s42_s15 }
  0x3d   :  { %p705_p13 = scmp.ne.s32.totalorder %s42_s15, %s704_s0  ;;  %p710_p1 = scmp.lt.s32.totalorder %s704_s0, %s704_s0 }
  0x3f   :  { %p711_p2 = por %p710_p1, %p709_p0 }
  0x41   :  { %p712_p3 = pnand %p711_p2, %p705_p13 }
  0x43   :  { %715 = shalt.err (!%p712_p3)
}
  0x44   :  { %47 = dma.hbm_to_vmem [thread:$0]  %s938_s2, 2048, %s42_s15, [#allocation6], %s771_s24, %s771_s24, %s772_s25  }
  0x45   :  { %s716_s30 = scalar_lea.hbm %s941_s5, 2048 }
  0x46   :  { %p717_p4 = scmp.ne.s32.totalorder %s941_s5, %s716_s30  ;;  %p720_p5 = scmp.lt.u32.totalorder %s716_s30, %s941_s5 }
  0x48   :  { %p722_p6 = pnand %p720_p5, %p717_p4 }
  0x4a   :  { %725 = shalt.err (!%p722_p6)
}
  0x4b   :  { %s726_s12 = scalar_lea.vmem %s68_s18, 2048  ;;  %p731_p8 = scmp.lt.s32.totalorder %s68_s18, %s68_s18 }
  0x4c   :  { %p727_p7 = scmp.ne.s32.totalorder %s68_s18, %s726_s12  ;;  %p732_p9 = scmp.lt.s32.totalorder %s726_s12, %s726_s12 }
  0x4e   :  { %p733_p10 = por %p732_p9, %p731_p8 }
  0x50   :  { %p734_p11 = pnand %p733_p10, %p727_p7 }
  0x52   :  { %737 = shalt.err (!%p734_p11)
}
  0x53   :  { %73 = dma.hbm_to_vmem [thread:$0]  %s941_s5, 2048, %s68_s18, [#allocation9], %s771_s24, %s771_s24, %s772_s25  }
  0x54   :  { %760 = dma.done.wait [#allocation3], 128  }
  0x55   :  { %761 = vsyncadd [#allocation3], 4294967168 }
  0x56   :  { %762 = dma.done.wait [#allocation6], 2176  }
  0x57   :  { %763 = vsyncadd [#allocation6], 4294965120 }
  0x58   :  { %764 = dma.done.wait [#allocation9], 4096  }
  0x59   :  { %765 = vsyncadd [#allocation9], 4294963200  ;;  %v775_v0 = vmov 0.0|0.0   ;;  %vm776_vm0 = vmmov 0   ;;  %v777_v1 = vmov 0.0   ;;  %v109_v2 = vld [vmem:[#allocation8] sm:$0xff] }
  0x5a   :  { %545 = vmatprep.subr.bf16.mxu0 %v775_v0  ;;  %569 = vmatprep.subr.bf16.mxu1 %v775_v0  ;;  %v110_v3 = vld [vmem:[#allocation8 + $0x8] sm:$0xff]  ;;  %v93_v4 = vld [vmem:[#allocation7] sm:$0xff]  ;;  %v111_v7 = vld [vmem:[#allocation8 + $0x10] sm:$0xff]  ;;  %s778_s14 = smov [#allocation11]  }
  0x5b   :  { %472 = vmatprep.mubr.msk.f32.mxu0 %vm776_vm0, %v777_v1  ;;  %507 = vmatprep.mubr.msk.f32.mxu1 %vm776_vm0, %v777_v1  ;;  %v546_v5 = vpack.c.bf16 %v110_v3, %v109_v2  ;;  %v94_v6 = vld [vmem:[#allocation7 + $0x8] sm:$0xff]  ;;  %v112_v8 = vld [vmem:[#allocation8 + $0x18] sm:$0xff]  ;;  %v95_v10 = vld [vmem:[#allocation7 + $0x10] sm:$0xff]  ;;  %s376_s15 = sshll.u32 %s778_s14, 4  ;;  %s377_s15 = int_to_ptr.vmem [resolvable:$true] %s376_s15 }
  0x5c   :  { %v570_v9 = vpack.c.bf16 %v94_v6, %v93_v4  ;;  %v96_v11 = vld [vmem:[#allocation7 + $0x18] sm:$0xff]  ;;  %v549_v12 = vpack.c.bf16 %v112_v8, %v111_v7  ;;  %v113_v14 = vld [vmem:[#allocation8 + $0x20] sm:$0xff]  ;;  %v114_v15 = vld [vmem:[#allocation8 + $0x28] sm:$0xff]  ;;  %p743_p13 = scmp.lt.s32.totalorder %s377_s15, %s377_s15 }
  0x5d   :  { %547 = vmatpush3.bf16.msra.mxu0 %v546_v5  ;;  %v573_v13 = vpack.c.bf16 %v96_v11, %v95_v10  ;;  %v97_v16 = vld [vmem:[#allocation7 + $0x20] sm:$0xff]  ;;  %v98_v17 = vld [vmem:[#allocation7 + $0x28] sm:$0xff]  ;;  %v552_v18 = vpack.c.bf16 %v114_v15, %v113_v14  ;;  %v115_v20 = vld [vmem:[#allocation8 + $0x30] sm:$0xff] }
  0x5e   :  { %571 = vmatpush3.bf16.msra.mxu1 %v570_v9  ;;  %548 = vmatprep.subr.bf16.mxu0 %v775_v0  ;;  %v576_v19 = vpack.c.bf16 %v98_v17, %v97_v16  ;;  %v116_v21 = vld [vmem:[#allocation8 + $0x38] sm:$0xff]  ;;  %v99_v22 = vld [vmem:[#allocation7 + $0x30] sm:$0xff]  ;;  %v117_v26 = vld [vmem:[#allocation8 + $0x40] sm:$0xff] }
  0x5f   :  { %572 = vmatprep.subr.bf16.mxu1 %v775_v0  ;;  %v100_v23 = vld [vmem:[#allocation7 + $0x38] sm:$0xff]  ;;  %v555_v24 = vpack.c.bf16 %v116_v21, %v115_v20  ;;  %v118_v27 = vld [vmem:[#allocation8 + $0x48] sm:$0xff]  ;;  %v101_v28 = vld [vmem:[#allocation7 + $0x40] sm:$0xff] }
  0x60   :  { %v579_v25 = vpack.c.bf16 %v100_v23, %v99_v22  ;;  %v102_v29 = vld [vmem:[#allocation7 + $0x48] sm:$0xff]  ;;  %v558_v30 = vpack.c.bf16 %v118_v27, %v117_v26  ;;  %v119_v32 = vld [vmem:[#allocation8 + $0x50] sm:$0xff]  ;;  %v120_v33 = vld [vmem:[#allocation8 + $0x58] sm:$0xff] }
  0x61   :  { %550 = vmatpush3.bf16.msra.mxu0 %v549_v12  ;;  %v582_v31 = vpack.c.bf16 %v102_v29, %v101_v28  ;;  %v103_v34 = vld [vmem:[#allocation7 + $0x50] sm:$0xff]  ;;  %v104_v35 = vld [vmem:[#allocation7 + $0x58] sm:$0xff]  ;;  %v561_v36 = vpack.c.bf16 %v120_v33, %v119_v32  ;;  %v121_v38 = vld [vmem:[#allocation8 + $0x60] sm:$0xff] }
  0x62   :  { %574 = vmatpush3.bf16.msra.mxu1 %v573_v13  ;;  %551 = vmatprep.subr.bf16.mxu0 %v775_v0  ;;  %v585_v37 = vpack.c.bf16 %v104_v35, %v103_v34  ;;  %v122_v39 = vld [vmem:[#allocation8 + $0x68] sm:$0xff]  ;;  %v105_v40 = vld [vmem:[#allocation7 + $0x60] sm:$0xff]  ;;  %v123_v44 = vld [vmem:[#allocation8 + $0x70] sm:$0xff] }
  0x63   :  { %575 = vmatprep.subr.bf16.mxu1 %v775_v0  ;;  %v106_v41 = vld [vmem:[#allocation7 + $0x68] sm:$0xff]  ;;  %v564_v42 = vpack.c.bf16 %v122_v39, %v121_v38  ;;  %v124_v45 = vld [vmem:[#allocation8 + $0x78] sm:$0xff]  ;;  %v107_v46 = vld [vmem:[#allocation7 + $0x70] sm:$0xff] }
  0x64   :  { %v588_v43 = vpack.c.bf16 %v106_v41, %v105_v40  ;;  %v108_v47 = vld [vmem:[#allocation7 + $0x78] sm:$0xff]  ;;  %v567_v48 = vpack.c.bf16 %v124_v45, %v123_v44  ;;  %v274_v50 = vld [vmem:[#allocation10] sm:$0xff]  ;;  %v275_v51 = vld [vmem:[#allocation10 + $0x8] sm:$0xff] }
  0x65   :  { %553 = vmatpush3.bf16.msra.mxu0 %v552_v18  ;;  %v591_v49 = vpack.c.bf16 %v108_v47, %v107_v46  ;;  %v92_v52 = vld [vmem:[#allocation5] sm:$0xff]  ;;  %v594_v53 = vpack.c.bf16 %v275_v51, %v274_v50  ;;  %v91_v54 = vld [vmem:[#allocation2] sm:$0xff]  ;;  %v278_v58 = vld [vmem:[#allocation10 + $0x20] sm:$0xff] }
  0x66   :  { %577 = vmatpush3.bf16.msra.mxu1 %v576_v19  ;;  %554 = vmatprep.subr.bf16.mxu0 %v775_v0  ;;  %v276_v55 = vld [vmem:[#allocation10 + $0x10] sm:$0xff]  ;;  %v277_v56 = vld [vmem:[#allocation10 + $0x18] sm:$0xff]  ;;  %v279_v59 = vld [vmem:[#allocation10 + $0x28] sm:$0xff] }
  0x67   :  { %578 = vmatprep.subr.bf16.mxu1 %v775_v0  ;;  %v597_v57 = vpack.c.bf16 %v277_v56, %v276_v55  ;;  %v600_v60 = vpack.c.bf16 %v279_v59, %v278_v58  ;;  %v280_v61 = vld [vmem:[#allocation10 + $0x30] sm:$0xff]  ;;  %v281_v62 = vld [vmem:[#allocation10 + $0x38] sm:$0xff]  ;;  %v282_v2 = vld [vmem:[#allocation10 + $0x40] sm:$0xff] }
  0x68   :  { %v603_v63 = vpack.c.bf16 %v281_v62, %v280_v61  ;;  %v283_v3 = vld [vmem:[#allocation10 + $0x48] sm:$0xff]  ;;  %v284_v5 = vld [vmem:[#allocation10 + $0x50] sm:$0xff]  ;;  %v285_v6 = vld [vmem:[#allocation10 + $0x58] sm:$0xff] }
  0x69   :  { %556 = vmatpush3.bf16.msra.mxu0 %v555_v24  ;;  %v606_v4 = vpack.c.bf16 %v283_v3, %v282_v2  ;;  %v286_v7 = vld [vmem:[#allocation10 + $0x60] sm:$0xff]  ;;  %v287_v8 = vld [vmem:[#allocation10 + $0x68] sm:$0xff]  ;;  %v288_v10 = vld [vmem:[#allocation10 + $0x70] sm:$0xff] }
  0x6a   :  { %580 = vmatpush3.bf16.msra.mxu1 %v579_v25  ;;  %557 = vmatprep.subr.bf16.mxu0 %v775_v0  ;;  %v612_v9 = vpack.c.bf16 %v287_v8, %v286_v7  ;;  %v289_v11 = vld [vmem:[#allocation10 + $0x78] sm:$0xff]  ;;  %v387_v15 = vld [vmem:[%s940_s4] ss:$0 sm:$0xff]  ;;  %s738_s4 = scalar_lea.vmem %s377_s15, 128 }
  0x6b   :  { %581 = vmatprep.subr.bf16.mxu1 %v775_v0  ;;  %v615_v12 = vpack.c.bf16 %v289_v11, %v288_v10  ;;  %p739_p12 = scmp.ne.s32.totalorder %s377_s15, %s738_s4  ;;  %p744_p0 = scmp.lt.s32.totalorder %s738_s4, %s738_s4 }
  0x6d   :  { %559 = vmatpush3.bf16.msra.mxu0 %v558_v30  ;;  %p745_p1 = por %p744_p0, %p743_p13 }
  0x6e   :  { %583 = vmatpush3.bf16.msra.mxu1 %v582_v31  ;;  %560 = vmatprep.subr.bf16.mxu0 %v775_v0 }
  0x6f   :  { %584 = vmatprep.subr.bf16.mxu1 %v775_v0  ;;  %p746_p2 = pnand %p745_p1, %p739_p12 }
  0x71   :  { %562 = vmatpush3.bf16.msra.mxu0 %v561_v36 }
  0x72   :  { %586 = vmatpush3.bf16.msra.mxu1 %v585_v37  ;;  %563 = vmatprep.subr.bf16.mxu0 %v775_v0 }
  0x73   :  { %587 = vmatprep.subr.bf16.mxu1 %v775_v0 }
  0x75   :  { %565 = vmatpush3.bf16.msra.mxu0 %v564_v42 }
  0x76   :  { %589 = vmatpush3.bf16.msra.mxu1 %v588_v43  ;;  %566 = vmatprep.subr.bf16.mxu0 %v775_v0 }
  0x77   :  { %590 = vmatprep.subr.bf16.mxu1 %v775_v0 }
  0x79   :  { %568 = vmatpush3.bf16.msra.mxu0 %v567_v48 }
  0x7a   :  { %592 = vmatpush3.bf16.msra.mxu1 %v591_v49  ;;  %593 = vmatprep.subr.bf16.mxu0 %v775_v0 }
  0x7c   :  { %473 = vmatmul.mubr.f32.vlgmr.msra.gmra.mrb[0].mxu0 %v92_v52 }
  0x7d   :  { %508 = vmatmul.mubr.f32.vlgmr.msra.gmra.mrb[0].mxu1 %v91_v54  ;;  %595 = vmatpush3.bf16.msra.mxu0 %v594_v53 }
  0x7e   :  { %596 = vmatprep.subr.bf16.mxu0 %v775_v0  ;;  %542 = vmatprep.mubr.msk.f32.mxu0 %vm776_vm0, %v777_v1  ;;  %v609_v1 = vpack.c.bf16 %v285_v6, %v284_v5 }
  0x81   :  { %598 = vmatpush3.bf16.msra.mxu0 %v597_v57 }
  0x82   :  { %599 = vmatprep.subr.bf16.mxu0 %v775_v0 }
  0x85   :  { %601 = vmatpush3.bf16.msra.mxu0 %v600_v60 }
  0x86   :  { %602 = vmatprep.subr.bf16.mxu0 %v775_v0 }
  0x89   :  { %604 = vmatpush3.bf16.msra.mxu0 %v603_v63 }
  0x8a   :  { %605 = vmatprep.subr.bf16.mxu0 %v775_v0 }
  0x8d   :  { %607 = vmatpush3.bf16.msra.mxu0 %v606_v4 }
  0x8e   :  { %608 = vmatprep.subr.bf16.mxu0 %v775_v0 }
  0x91   :  { %610 = vmatpush3.bf16.msra.mxu0 %v609_v1 }
  0x92   :  { %611 = vmatprep.subr.bf16.mxu0 %v775_v0 }
  0x95   :  { %613 = vmatpush3.bf16.msra.mxu0 %v612_v9 }
  0x96   :  { %614 = vmatprep.subr.bf16.mxu0 %v775_v0  ;;  %v388_v0 = vld [vmem:[%s942_s6] ss:$0 sm:$0xff] }
  0x99   :  { %616 = vmatpush3.bf16.msra.mxu0 %v615_v12 }
 0x14f   :  { %v191_v13 = vpop.f32.mrb[0].mxu0 }
 0x150   :  { %v261_v14 = vpop.f32.mrb[0].mxu1  ;;  %v474_v16 = vpop.f32.mrb[1].mxu0 }
 0x151   :  { %v262_v17 = vadd.f32 %v261_v14, %v191_v13  ;;  %v509_v18 = vpop.f32.mrb[1].mxu1 }
 0x153   :  { %v272_v19 = vadd.f32 %v387_v15, %v262_v17 }
 0x155   :  { %v273_v20 = vmax.f32 %v272_v19, 0.0 }
 0x157   :  { %543 = vmatmul.mubr.f32.vlgmr.msra.gmra.mrb[2].mxu0 %v273_v20 }
 0x22a   :  { %v363_v21 = vpop.f32.mrb[2].mxu0 }
 0x22b   :  { %v364_v22 = vadd.f32 %v388_v0, %v363_v21  ;;  %v544_v23 = vpop.f32.mrb[3].mxu0 }
 0x22d   :  { %v367_v24 = vmul.f32 0.1, %v364_v22 }
 0x22f   :  { %v368_v25 = vadd.f32 %v367_v24, %v91_v54 }
 0x231   :  { %369 = vst [vmem:[#allocation11] sm:$0xff] %v368_v25 }
 0x232   :  { %749 = shalt.err (!%p746_p2)
}
 0x233   :  { %s750_s6 = scalar_lea.hbm %s943_s7, 128 }
 0x234   :  { %p751_p3 = scmp.ne.s32.totalorder %s943_s7, %s750_s6  ;;  %p754_p4 = scmp.lt.u32.totalorder %s750_s6, %s943_s7 }
 0x236   :  { %p756_p5 = pnand %p754_p4, %p751_p3 }
 0x238   :  { %759 = shalt.err (!%p756_p5)
}
 0x239   :  { %379 = dma.vmem_to_hbm [thread:$0]  %s377_s15, 128, %s943_s7, [#allocation4]  }
 0x23a   :  { %766 = dma.done.wait [#allocation4], 128  }
 0x23b   :  { %767 = vsyncadd [#allocation4], 4294967168 }
 0x23c   :  { %383 = vsyncpa [#allocation3], 1 }
 0x23d   :  { %384 = vsyncpa [#allocation6], 1 }
 0x23e   :  { %385 = vsyncpa [#allocation9], 1 }
 0x23f   :  { %386 = vsyncpa [#allocation4], 1 }

</bundles_post_ra>
